<compile_context>
chip_gen: v5e
topology: v5e:2x2
jax: 0.10.0
libtpu: 0.0.40
codegen_flags: <defaults>
</compile_context>

<pallas_src>
import jax
import jax.numpy as jnp
from jax.experimental import pallas as pl
from jax.experimental.pallas import tpu as pltpu

G_ACCEL = 9.81  # gravitational constant `g` used for force normalisation
_LANES = 128
_SUBLANES = 8


def _cdiv(a, b):
    return -(-a // b)


def _round_up(a, b):
    return _cdiv(a, b) * b


def _device_kind():
    try:
        return jax.devices()[0].device_kind.lower()
    except Exception:
        return ""


def _default_num_partials(kind):
    # JAX devices exposing two TensorCores: v4 / v5p megacore, v7x.
    if any(tag in kind for tag in ("v7", "v4", "v5p")):
        return 2
    return 1


def _default_tile_rows(kind):
    if "v7" in kind:
        return 4096   # 3.2 TB/s HBM: larger blocks to amortise ~0.35us/step
    if "v5" in kind and "lite" in kind:
        return 1024   # v5e: ~820 GB/s, 1 MiB pairs already amortise overhead
    return 2048       # v6e and default


def _sq_err_kernel(scale_ref, pred_ref, targ_ref, out_ref):
    """Accumulate (pred * inv_scale - targ)^2 into a tiny (8, 128) partial.

    scale_ref : SMEM (1,)               f32 -- 1 / (total_mass * g)
    pred_ref  : VMEM (tile_rows, 128)        -- raw z-forces (lane-dense)
    targ_ref  : VMEM (tile_rows, 128)        -- target GRFs  (lane-dense)
    out_ref   : VMEM (8, 128)           f32 -- per-partial accumulator
                                               (same block for every t -> P3)
    """
    t = pl.program_id(1)

    @pl.when(t == 0)
    def _():
        out_ref[...] = jnp.zeros_like(out_ref)

    inv_scale = scale_ref[0]
    pred = pred_ref[...].astype(jnp.float32)
    targ = targ_ref[...].astype(jnp.float32)
    diff = pred * inv_scale - targ
    sq = diff * diff
    # (tile_rows, 128) -> (tile_rows//8, 8, 128): inner (8, 128) matches the
    # native vreg tile, so the axis-0 reduce is pure VALU vreg adds (no XLU).
    out_ref[...] += jnp.sum(sq.reshape(-1, _SUBLANES, _LANES), axis=0)


def model_optimiser_loss(forces, target, paw_joints, total_mass,
                         frame_delay=0, tile_rows=None, num_partials=None,
                         min_pallas_elems=1 << 20, input_dtype=None):
    """JAX wrapper reproducing ModelOptimiser.forward() semantics
    (dyn_format == 'grfs', param_selection == 'paws').

    forces           : (F, J, 3) solver output (external solver not ported).
    target           : (F, N) measured GRFs, already weight-normalised.
    paw_joints       : static tuple of joint indices (N of them).
    total_mass       : python float OR traced JAX scalar (no recompile).
    frame_delay      : static python int (changes shapes -> must be static).
    tile_rows        : frame-tile size in 128-lane rows (None -> per-chip default).
    num_partials     : leading 'parallel' grid axis (None -> per-chip default).
    min_pallas_elems : below this element count, use one fused XLA reduction.
    input_dtype      : e.g. jnp.bfloat16 to halve kernel HBM reads (f32 accum).
    """
    # --- glue: gather z-component of forces at the paw joints -> (F, N) ---
    pred_raw = forces[:, jnp.asarray(paw_joints), 2].astype(jnp.float32)

    # --- glue: frame-delay alignment (static int: it determines shapes) ---
    frame_delay = int(frame_delay)
    if frame_delay > 0:
        targ = target[frame_delay:]
        pred_raw = pred_raw[:-frame_delay]
    elif frame_delay < 0:
        targ = target[:frame_delay]
        pred_raw = pred_raw[-frame_delay:]
    else:
        targ = target
    targ = targ.astype(jnp.float32)

    F, N = pred_raw.shape
    total = F * N  # true element count for the mean

    # Runtime scalar: works for python floats and traced arrays alike.
    inv_scale = jnp.float32(1.0) / (
        jnp.asarray(total_mass, jnp.float32) * jnp.float32(G_ACCEL))

    # --- small-problem cutoff: fused XLA reduction beats kernel overheads ---
    if total < int(min_pallas_elems):
        diff = pred_raw * inv_scale - targ
        return jnp.sqrt(jnp.sum(diff * diff) / jnp.float32(total))

    # --- generation-aware grid parameters ---
    kind = _device_kind()
    if num_partials is None:
        num_partials = _default_num_partials(kind)
    if tile_rows is None:
        tile_rows = _default_tile_rows(kind)

    rows = _cdiv(total, _LANES)
    num_partials = max(1, min(int(num_partials), _cdiv(rows, _SUBLANES)))
    rows_per_core = _cdiv(rows, num_partials)
    tiles_per_core = _cdiv(rows_per_core, int(tile_rows))
    # Balanced tiles: cap padding waste at <~8 rows per tile.
    tile_rows_eff = _round_up(_cdiv(rows_per_core, tiles_per_core), _SUBLANES)
    padded_rows = num_partials * tiles_per_core * tile_rows_eff
    pad = padded_rows * _LANES - total

    kdtype = jnp.float32 if input_dtype is None else input_dtype
    # Small zero-pad (fuses with the gather/slice producer fusions); padded
    # lanes contribute exactly 0 to the sum since both operands are 0.
    pred2d = jnp.pad(pred_raw.reshape(-1), (0, pad)) \
        .reshape(padded_rows, _LANES).astype(kdtype)
    targ2d = jnp.pad(targ.reshape(-1), (0, pad)) \
        .reshape(padded_rows, _LANES).astype(kdtype)

    scale_arr = inv_scale.reshape((1,))
    tpc = int(tiles_per_core)

    partials = pl.pallas_call(
        _sq_err_kernel,
        out_shape=jax.ShapeDtypeStruct(
            (num_partials, _SUBLANES, _LANES), jnp.float32),
        grid=(num_partials, tpc),
        in_specs=[
            pl.BlockSpec(memory_space=pltpu.MemorySpace.SMEM),
            pl.BlockSpec((tile_rows_eff, _LANES),
                         lambda p, t: (p * tpc + t, 0)),
            pl.BlockSpec((tile_rows_eff, _LANES),
                         lambda p, t: (p * tpc + t, 0)),
        ],
        out_specs=pl.BlockSpec((None, _SUBLANES, _LANES),
                               lambda p, t: (p, 0, 0)),
        compiler_params=pltpu.CompilerParams(
            dimension_semantics=("parallel", "arbitrary")),
    )(scale_arr, pred2d, targ2d)

    # Tiny epilogue: combine num_partials * 4 KiB of partials, divide by the
    # TRUE (unpadded) element count, sqrt -> RMS loss.
    return jnp.sqrt(jnp.sum(partials) / jnp.float32(total))


if __name__ == "__main__":
    key = jax.random.PRNGKey(0)
    k_forces, k_target, k_forces2, k_target2 = jax.random.split(key, 4)

    # Small, deterministic synthetic problem:
    #   F frames, J joints, 3 force components; 4 paw joints; GRF targets.
    F, J = 128, 8
    paw_joints = (1, 3, 5, 7)               # solver_kwargs['foot_joints']
    total_mass = 25.0                        # solver.total_mass (kg)

    forces = jax.random.normal(k_forces, (F, J, 3), dtype=jnp.float32) \
        * (total_mass * G_ACCEL) * 0.25
    target = jax.random.uniform(k_target, (F, len(paw_joints)),
                                dtype=jnp.float32)

    def reference(frcs, tgt, frame_delay):
        pred = frcs[:, jnp.asarray(paw_joints), 2] / (total_mass * G_ACCEL)
        if frame_delay > 0:
            t, p = tgt[frame_delay:], pred[:-frame_delay]
        elif frame_delay < 0:
            t, p = tgt[:frame_delay], pred[-frame_delay:]
        else:
            t, p = tgt, pred
        return jnp.sqrt(jnp.mean((p - t) ** 2))

    # 1) Pallas path (cutoff disabled): frame_delay in {0, 3, -2}, including
    #    non-divisible aligned frame counts.
    for fd in (0, 3, -2):
        loss = model_optimiser_loss(forces, target, paw_joints, total_mass,
                                    frame_delay=fd, min_pallas_elems=0)
        loss = jax.block_until_ready(loss)
        loss_ref = reference(forces, target, fd)
        assert jnp.allclose(loss, loss_ref, rtol=1e-5, atol=1e-6), \
            (fd, loss, loss_ref)

    # 2) Slightly larger case exercising multi-tile accumulation and the
    #    two-partial 'parallel' axis explicitly (still small shapes).
    F2 = 600
    forces2 = jax.random.normal(k_forces2, (F2, J, 3), dtype=jnp.float32) \
        * (total_mass * G_ACCEL) * 0.25
    target2 = jax.random.uniform(k_target2, (F2, len(paw_joints)),
                                 dtype=jnp.float32)
    loss2 = model_optimiser_loss(forces2, target2, paw_joints, total_mass,
                                 frame_delay=0, tile_rows=8, num_partials=2,
                                 min_pallas_elems=0)
    loss2 = jax.block_until_ready(loss2)
    assert jnp.allclose(loss2, reference(forces2, target2, 0),
                        rtol=1e-5, atol=1e-6)

    # 3) bf16-input kernel path (halved HBM reads, f32 accumulation).
    loss_bf16 = model_optimiser_loss(forces2, target2, paw_joints, total_mass,
                                     frame_delay=0, tile_rows=8,
                                     num_partials=2, min_pallas_elems=0,
                                     input_dtype=jnp.bfloat16)
    loss_bf16 = jax.block_until_ready(loss_bf16)
    assert jnp.allclose(loss_bf16, reference(forces2, target2, 0),
                        rtol=5e-2, atol=5e-3)

    # 4) Small-problem XLA fallback (default cutoff) with a TRACED total_mass:
    #    no ConcretizationTypeError, no per-value recompiles.
    loss_small = jax.jit(
        lambda m: model_optimiser_loss(forces, target, paw_joints, m,
                                       frame_delay=0)
    )(jnp.float32(total_mass))
    loss_small = jax.block_until_ready(loss_small)
    assert jnp.allclose(loss_small, reference(forces, target, 0),
                        rtol=1e-5, atol=1e-6)

    print("KERNEL_OK")
</pallas_src>

<mosaic_0001>
module attributes {stable_mosaic.version = 11 : i64} {
  func.func @_sq_err_kernel(%arg0: i32, %arg1: i32, %arg2: memref<1xf32, #tpu.memory_space<smem>>, %arg3: memref<8x128xf32, #tpu.memory_space<vmem>>, %arg4: memref<8x128xf32, #tpu.memory_space<vmem>>, %arg5: memref<1x8x128xf32, #tpu.memory_space<vmem>>) attributes {dimension_semantics = [#tpu.dimension_semantics<parallel>, #tpu.dimension_semantics<arbitrary>], iteration_bounds = array<i64: 1, 1>, scalar_prefetch = 0 : i64, scratch_operands = 0 : i64, tpu.core_type = #tpu.core_type<tc>, window_params = [{transform_indices = @transform_0, window_bounds = array<i64: 1>}, {transform_indices = @transform_1, window_bounds = array<i64: 8, 128>}, {transform_indices = @transform_2, window_bounds = array<i64: 8, 128>}, {transform_indices = @transform_3, window_bounds = array<i64: 1, 8, 128>}]} {
    %c0_i32 = arith.constant 0 : i32
    %0 = arith.cmpi eq, %arg1, %c0_i32 : i32
    %1 = arith.extui %0 : i1 to i32
    %c0_i32_0 = arith.constant 0 : i32
    %2 = arith.cmpi ne, %1, %c0_i32_0 : i32
    scf.if %2 {
      %cst_11 = arith.constant 0.000000e+00 : f32
      %18 = vector.broadcast %cst_11 : f32 to vector<8x128xf32>
      %c0_12 = arith.constant 0 : index
      %c0_13 = arith.constant 0 : index
      %c0_14 = arith.constant 0 : index
      %19 = vector.load %arg5[%c0_12, %c0_13, %c0_14] : memref<1x8x128xf32, #tpu.memory_space<vmem>>, vector<1x8x128xf32>
      %20 = vector.shape_cast %19 : vector<1x8x128xf32> to vector<8x128xf32>
      %21 = vector.shape_cast %18 : vector<8x128xf32> to vector<1x8x128xf32>
      tpu.vector_store %arg5[%c0_12, %c0_13, %c0_14], %21 {strides = array<i32>} : memref<1x8x128xf32, #tpu.memory_space<vmem>>, vector<1x8x128xf32>,
    } else {
    }
    %c0 = arith.constant 0 : index
    %3 = memref.load %arg2[%c0] : memref<1xf32, #tpu.memory_space<smem>>
    %c0_1 = arith.constant 0 : index
    %c0_2 = arith.constant 0 : index
    %4 = vector.load %arg3[%c0_1, %c0_2] : memref<8x128xf32, #tpu.memory_space<vmem>>, vector<8x128xf32>
    %c0_3 = arith.constant 0 : index
    %c0_4 = arith.constant 0 : index
    %5 = vector.load %arg4[%c0_3, %c0_4] : memref<8x128xf32, #tpu.memory_space<vmem>>, vector<8x128xf32>
    %6 = vector.broadcast %3 : f32 to vector<8x128xf32>
    %7 = arith.mulf %4, %6 : vector<8x128xf32>
    %8 = arith.subf %7, %5 : vector<8x128xf32>
    %9 = arith.mulf %8, %8 : vector<8x128xf32>
    %c0_5 = arith.constant 0 : index
    %c0_6 = arith.constant 0 : index
    %c0_7 = arith.constant 0 : index
    %10 = vector.load %arg5[%c0_5, %c0_6, %c0_7] : memref<1x8x128xf32, #tpu.memory_space<vmem>>, vector<1x8x128xf32>
    %11 = vector.shape_cast %10 : vector<1x8x128xf32> to vector<8x128xf32>
    %12 = vector.shape_cast %9 : vector<8x128xf32> to vector<1x8x128xf32>
    %cst = arith.constant dense<0.000000e+00> : vector<8x128xf32>
    %13 = vector.multi_reduction <add>, %12, %cst [0] : vector<1x8x128xf32> to vector<8x128xf32>
    %14 = arith.addf %11, %13 : vector<8x128xf32>
    %c0_8 = arith.constant 0 : index
    %c0_9 = arith.constant 0 : index
    %c0_10 = arith.constant 0 : index
    %15 = vector.load %arg5[%c0_8, %c0_9, %c0_10] : memref<1x8x128xf32, #tpu.memory_space<vmem>>, vector<1x8x128xf32>
    %16 = vector.shape_cast %15 : vector<1x8x128xf32> to vector<8x128xf32>
    %17 = vector.shape_cast %14 : vector<8x128xf32> to vector<1x8x128xf32>
    tpu.vector_store %arg5[%c0_8, %c0_9, %c0_10], %17 {strides = array<i32>} : memref<1x8x128xf32, #tpu.memory_space<vmem>>, vector<1x8x128xf32>,
    return
  }
  func.func @transform_0(%arg0: i32, %arg1: i32) -> i32 {
    %c0_i32 = arith.constant 0 : i32
    %c0_i32_0 = arith.constant 0 : i32
    return %c0_i32 : i32
  }
  func.func @transform_1(%arg0: i32, %arg1: i32) -> (i32, i32) {
    %c1_i32 = arith.constant 1 : i32
    %0 = arith.muli %arg0, %c1_i32 : i32
    %1 = arith.addi %0, %arg1 : i32
    %c0_i32 = arith.constant 0 : i32
    %c0_i32_0 = arith.constant 0 : i32
    return %1, %c0_i32 : i32, i32
  }
  func.func @transform_2(%arg0: i32, %arg1: i32) -> (i32, i32) {
    %c1_i32 = arith.constant 1 : i32
    %0 = arith.muli %arg0, %c1_i32 : i32
    %1 = arith.addi %0, %arg1 : i32
    %c0_i32 = arith.constant 0 : i32
    %c0_i32_0 = arith.constant 0 : i32
    return %1, %c0_i32 : i32, i32
  }
  func.func @transform_3(%arg0: i32, %arg1: i32) -> (i32, i32, i32) {
    %c0_i32 = arith.constant 0 : i32
    %c0_i32_0 = arith.constant 0 : i32
    %c0_i32_1 = arith.constant 0 : i32
    return %arg0, %c0_i32, %c0_i32_0 : i32, i32, i32
  }
}

</mosaic_0001>

<bundles_post_ra>
// kernel: tpu_custom_call.1
= control target key start
LH: loop header
LB: loop body
LE: loop exit
PB: predicated region body
PF: predicated region fallthrough
CT: control target
= control target key end

     0   :  { %9 = vsyncpa [#allocation4], 0  ;;  %s203_s0 = inlined_call_operand.<no memory space> [shape: f32[1], index: 0, kind: input, shape index: {}]   ;;  %s204_s1 = inlined_call_operand.hbm [shape: f32[8,128], index: 1, kind: input, shape index: {}]   ;;  %s205_s2 = inlined_call_operand.hbm [shape: f32[8,128], index: 2, kind: input, shape index: {}]   ;;  %s206_s3 = inlined_call_operand.hbm [shape: f32[1,8,128], index: 3, kind: output, shape index: {}]  }
   0x1   :  { %10 = vsyncpa [#allocation7], 0 }
   0x2   :  { %11 = vsyncpa [#allocation5], 0  ;;  %s22_s14 = sshll.u32 %s204_s1, 4  ;;  %s168_s15 = smov [#allocation3]   ;;  %s23_s14 = int_to_ptr.hbm [resolvable:$true] %s22_s14 }
   0x3   :  { %s24_s16 = sshll.u32 %s168_s15, 4  ;;  %s36_s19 = sshll.u32 %s205_s2, 4  ;;  %s25_s16 = int_to_ptr.vmem [resolvable:$true] %s24_s16  ;;  %s37_s19 = int_to_ptr.hbm [resolvable:$true] %s36_s19 }
   0x4   :  { %27 = dma.hbm_to_vmem [thread:$0]  %s23_s14, 128, %s25_s16, [#allocation4]  }
   0x5   :  { %s169_s20 = smov [#allocation6]  }
   0x6   :  { %s38_s21 = sshll.u32 %s169_s20, 4  ;;  %s39_s21 = int_to_ptr.vmem [resolvable:$true] %s38_s21 }
   0x7   :  { %41 = dma.hbm_to_vmem [thread:$0]  %s37_s19, 128, %s39_s21, [#allocation7]  }
   0x8   :  { %162 = dma.done.wait [#allocation4], 128  }
   0x9   :  { %163 = vsyncadd [#allocation4], 4294967168 }
   0xa   :  { %164 = dma.done.wait [#allocation7], 128  }
   0xb   :  { %165 = vsyncadd [#allocation7], 4294967168  ;;  %v60_v0 = vstv %s203_s0  ;;  %v58_v1 = vld [vmem:[#allocation3] sm:$0xff]  ;;  %v59_v2 = vld [vmem:[#allocation6] sm:$0xff]  ;;  %s170_s23 = smov [#allocation8]   ;;  %s75_s26 = sshll.u32 %s206_s3, 4  ;;  %s76_s26 = int_to_ptr.hbm [resolvable:$true] %s75_s26 }
   0xc   :  { %v61_v3 = vmul.f32 %v60_v0, %v58_v1  ;;  %s73_s2 = sshll.u32 %s170_s23, 4  ;;  %s74_s2 = int_to_ptr.vmem [resolvable:$true] %s73_s2 }
   0xe   :  { %v62_v4 = vsub.f32 %v61_v3, %v59_v2 }
  0x10   :  { %v63_v5 = vmul.f32 %v62_v4, %v62_v4 }
  0x12   :  { %67 = vst [vmem:[#allocation8] sm:$0xff] %v63_v5 }
  0x13   :  { %78 = dma.vmem_to_hbm [thread:$0]  %s74_s2, 128, %s76_s26, [#allocation5]  }
  0x14   :  { %166 = dma.done.wait [#allocation5], 128  }
  0x15   :  { %167 = vsyncadd [#allocation5], 4294967168 }
  0x16   :  { %83 = vsyncpa [#allocation4], 1 }
  0x17   :  { %84 = vsyncpa [#allocation7], 1 }
  0x18   :  { %85 = vsyncpa [#allocation5], 1 }

</bundles_post_ra>
